<compile_context>
chip_gen: v6e
topology: v6e:2x2x1
jax: 0.10.0
libtpu: 0.0.40
codegen_flags: <defaults>
</compile_context>

<pallas_src>
import functools

import jax
import jax.numpy as jnp
from jax.experimental import pallas as pl
from jax.experimental.pallas import tpu as pltpu

HIDDEN = 32                 # logical hidden width of the module
LANE = 128                  # TPU lane width; output dim lane-padded to this
VMEM_BUDGET = 28 << 20      # target double-buffered working set (all chips)


def _round_up(n, m):
    return ((n + m - 1) // m) * m


def _mlp2_kernel(x_ref, w1_ref, b1_ref, w2_ref, b2_ref, o_ref):
    # Layer 1: Linear(D, 32) + ReLU  (MXU matmul, f32 accumulate)
    h = jnp.dot(x_ref[...], w1_ref[...], preferred_element_type=jnp.float32)
    h = jnp.maximum(h + b1_ref[...], 0.0)          # f32 bias + ReLU (VPU)
    # Layer 2: Linear(32, O_pad)  -> lane-dense (tb, 128) store
    y = jnp.dot(h, w2_ref[...], preferred_element_type=jnp.float32)
    o_ref[...] = (y + b2_ref[...]).astype(o_ref.dtype)


def prepare_params(w1, b1, w2, b2, *, use_bf16=False):
    """One-time parameter prep (call OUTSIDE the per-step forward).

    w1: (D, 32), b1: (32,), w2: (32, O), b2: (O,)
    Returns (w1_p, b1_p, w2_p, b2_p) ready for mlp2_forward.
    """
    O = w2.shape[1]
    O_pad = _round_up(max(O, 1), LANE)
    w1_p = w1.astype(jnp.bfloat16 if use_bf16 else jnp.float32)   # (D, 32)
    b1_p = b1.reshape(1, HIDDEN).astype(jnp.float32)              # (1, 32)
    w2_p = jnp.zeros((HIDDEN, O_pad), jnp.float32).at[:, :O].set(w2)
    b2_p = jnp.zeros((1, O_pad), jnp.float32).at[:, :O].set(b2)
    return w1_p, b1_p, w2_p, b2_p


@functools.partial(jax.jit, static_argnames=("out_dim", "block_b", "use_bf16"))
def mlp2_forward(x_nchw, w1_p, b1_p, w2_p, b2_p, *, out_dim,
                 block_b=None, use_bf16=False):
    """Fused MLP2 forward.  x_nchw: (B, C, H, W).  Returns (B, out_dim) f32."""
    B = x_nchw.shape[0]
    x2d = x_nchw.reshape(B, -1)                    # nn.Flatten (row-major)
    D = x2d.shape[1]
    O_pad = w2_p.shape[1]
    xbytes = 2 if use_bf16 else 4
    x2d = x2d.astype(jnp.bfloat16 if use_bf16 else jnp.float32)

    # ---- batch-tile selection: VMEM-budget- and generation-aware ----------
    weight_bytes = 2 * (D * HIDDEN * xbytes + HIDDEN * O_pad * 4) \
        + 2 * 4 * (HIDDEN + O_pad)                                  # dbl-buffered weights/biases
    row_bytes = 2 * (D * xbytes + O_pad * 4) + 4 * (HIDDEN + O_pad)  # dbl-buffered x/out + temps
    tb_budget = max(8, ((VMEM_BUDGET - weight_bytes) // row_bytes) // 8 * 8)
    cap = block_b if block_b is not None else (1024 if D <= 2048 else 512)
    tb_max = max(8, min(cap, tb_budget))

    if B <= 8:
        tb = B                                      # full-extent row block (tiny batch)
    else:
        # >= 2 grid steps whenever possible (v7x megacore) + small tail waste.
        tb = min(tb_max, _round_up(pl.cdiv(B, 2), 8))
        tb = max(8, min(tb, (B // 8) * 8))          # multiple of 8, <= B
    n_tiles = pl.cdiv(B, tb)                        # ragged last tile: no x pad/copy

    footprint = weight_bytes + tb * row_bytes
    vmem_limit = int(min(48 << 20, max(32 << 20, footprint * 5 // 4)))

    cost = pl.CostEstimate(
        flops=2 * B * (D * HIDDEN + HIDDEN * O_pad),
        transcendentals=0,
        bytes_accessed=xbytes * (B * D + D * HIDDEN)
        + 4 * (HIDDEN * O_pad + B * O_pad),
    )

    out = pl.pallas_call(
        _mlp2_kernel,
        out_shape=jax.ShapeDtypeStruct((B, O_pad), jnp.float32),
        grid=(n_tiles,),
        in_specs=[
            pl.BlockSpec((tb, D), lambda i: (i, 0)),          # x rows: tiled over B
            pl.BlockSpec((D, HIDDEN), lambda i: (0, 0)),      # w1: VMEM-resident
            pl.BlockSpec((1, HIDDEN), lambda i: (0, 0)),      # b1: VMEM-resident
            pl.BlockSpec((HIDDEN, O_pad), lambda i: (0, 0)),  # w2: VMEM-resident
            pl.BlockSpec((1, O_pad), lambda i: (0, 0)),       # b2: VMEM-resident
        ],
        out_specs=pl.BlockSpec((tb, O_pad), lambda i: (i, 0)),  # lane-dense store
        compiler_params=pltpu.CompilerParams(
            dimension_semantics=("parallel",),
            vmem_limit_bytes=vmem_limit),
        cost_estimate=cost,
    )(x2d, w1_p, b1_p, w2_p, b2_p)

    return out[:, :out_dim]


def init_params(key, input_dim, output_dim):
    """Match the module's init: layer1 xavier_uniform weight + zero bias;
    layer2 PyTorch-default uniform +/- 1/sqrt(fan_in)."""
    k1, k2, k3 = jax.random.split(key, 3)
    bound1 = (6.0 / (input_dim + HIDDEN)) ** 0.5
    w1 = jax.random.uniform(k1, (input_dim, HIDDEN), jnp.float32,
                            minval=-bound1, maxval=bound1)
    b1 = jnp.zeros((HIDDEN,), jnp.float32)
    bound2 = 1.0 / (HIDDEN ** 0.5)
    w2 = jax.random.uniform(k2, (HIDDEN, output_dim), jnp.float32,
                            minval=-bound2, maxval=bound2)
    b2 = jax.random.uniform(k3, (output_dim,), jnp.float32,
                            minval=-bound2, maxval=bound2)
    return w1, b1, w2, b2


def _ref_forward(x_nchw, w1, b1, w2, b2):
    x2d = x_nchw.reshape(x_nchw.shape[0], -1)
    return jnp.maximum(x2d @ w1 + b1, 0.0) @ w2 + b2


if __name__ == "__main__":
    key = jax.random.PRNGKey(0)
    kx, kp, kx2 = jax.random.split(key, 3)

    # Small shapes consistent with the module: NCHW input flattened to D=C*H*W.
    B, C, H, W = 2, 4, 16, 16
    D = C * H * W            # input_dim = 1024
    OUT = 10                 # output_dim

    w1, b1, w2, b2 = init_params(kp, D, OUT)
    w1_p, b1_p, w2_p, b2_p = prepare_params(w1, b1, w2, b2)   # once, outside jit

    # 1) tiny-batch path (single full-extent row block).
    x = jax.random.normal(kx, (B, C, H, W), jnp.float32)
    y = mlp2_forward(x, w1_p, b1_p, w2_p, b2_p, out_dim=OUT)
    jax.block_until_ready(y)
    ref = _ref_forward(x, w1, b1, w2, b2)
    assert y.shape == (B, OUT)
    assert jnp.allclose(y, ref, atol=1e-4, rtol=1e-4)

    # 2) multi-tile path: B=300 -> tb=152, 2 grid steps, ragged last tile
    #    (exercises the no-pad / masked-writeback path).
    B2 = 300
    x_big = jax.random.normal(kx2, (B2, C, H, W), jnp.float32)
    y_big = mlp2_forward(x_big, w1_p, b1_p, w2_p, b2_p, out_dim=OUT)
    jax.block_until_ready(y_big)
    ref_big = _ref_forward(x_big, w1, b1, w2, b2)
    assert y_big.shape == (B2, OUT)
    assert jnp.allclose(y_big, ref_big, atol=1e-4, rtol=1e-4)

    # 3) optional bf16 layer-1 path (f32 accumulate): loose numeric check only.
    w1_b, b1_b, w2_b, b2_b = prepare_params(w1, b1, w2, b2, use_bf16=True)
    y_bf = mlp2_forward(x_big, w1_b, b1_b, w2_b, b2_b, out_dim=OUT,
                        use_bf16=True)
    jax.block_until_ready(y_bf)
    assert y_bf.shape == (B2, OUT)
    assert bool(jnp.all(jnp.isfinite(y_bf)))
    assert float(jnp.max(jnp.abs(y_bf - ref_big))) < 0.1

    print("KERNEL_OK")
</pallas_src>

<mosaic_0001>
module attributes {stable_mosaic.version = 11 : i64} {
  func.func @_mlp2_kernel(%arg0: i32, %arg1: memref<2x1024xf32, #tpu.memory_space<vmem>>, %arg2: memref<1024x32xf32, #tpu.memory_space<vmem>>, %arg3: memref<1x32xf32, #tpu.memory_space<vmem>>, %arg4: memref<32x128xf32, #tpu.memory_space<vmem>>, %arg5: memref<1x128xf32, #tpu.memory_space<vmem>>, %arg6: memref<2x128xf32, #tpu.memory_space<vmem>>) attributes {dimension_semantics = [#tpu.dimension_semantics<parallel>], iteration_bounds = array<i64: 1>, scalar_prefetch = 0 : i64, scratch_operands = 0 : i64, tpu.core_type = #tpu.core_type<tc>, window_params = [{transform_indices = @transform_0, window_bounds = array<i64: 2, 1024>}, {pipeline_mode = #tpu.pipeline_mode<synchronous>, transform_indices = @transform_1, window_bounds = array<i64: 1024, 32>}, {pipeline_mode = #tpu.pipeline_mode<synchronous>, transform_indices = @transform_2, window_bounds = array<i64: 1, 32>}, {pipeline_mode = #tpu.pipeline_mode<synchronous>, transform_indices = @transform_3, window_bounds = array<i64: 32, 128>}, {pipeline_mode = #tpu.pipeline_mode<synchronous>, transform_indices = @transform_4, window_bounds = array<i64: 1, 128>}, {transform_indices = @transform_5, window_bounds = array<i64: 2, 128>}]} {
    %c0 = arith.constant 0 : index
    %c0_0 = arith.constant 0 : index
    %0 = vector.load %arg1[%c0, %c0_0] : memref<2x1024xf32, #tpu.memory_space<vmem>>, vector<2x1024xf32>
    %c0_1 = arith.constant 0 : index
    %c0_2 = arith.constant 0 : index
    %1 = vector.load %arg2[%c0_1, %c0_2] : memref<1024x32xf32, #tpu.memory_space<vmem>>, vector<1024x32xf32>
    %cst = arith.constant dense<0.000000e+00> : vector<2x32xf32>
    %2 = tpu.matmul %0, %1, %cst {dimension_numbers = #tpu.dot_dimension_numbers<[1], [0], [0], [1], [0, 0, 1, 1], [], []>} : vector<2x1024xf32>, vector<1024x32xf32>, vector<2x32xf32> -> vector<2x32xf32>
    %c0_3 = arith.constant 0 : index
    %c0_4 = arith.constant 0 : index
    %3 = vector.load %arg3[%c0_3, %c0_4] : memref<1x32xf32, #tpu.memory_space<vmem>>, vector<1x32xf32>
    %4 = vector.broadcast %3 : vector<1x32xf32> to vector<2x32xf32>
    %5 = arith.addf %2, %4 : vector<2x32xf32>
    %cst_5 = arith.constant 0.000000e+00 : f32
    %6 = vector.broadcast %cst_5 : f32 to vector<2x32xf32>
    %7 = arith.maximumf %5, %6 : vector<2x32xf32>
    %c0_6 = arith.constant 0 : index
    %c0_7 = arith.constant 0 : index
    %8 = vector.load %arg4[%c0_6, %c0_7] : memref<32x128xf32, #tpu.memory_space<vmem>>, vector<32x128xf32>
    %cst_8 = arith.constant dense<0.000000e+00> : vector<2x128xf32>
    %9 = tpu.matmul %7, %8, %cst_8 {dimension_numbers = #tpu.dot_dimension_numbers<[1], [0], [0], [1], [0, 0, 1, 1], [], []>} : vector<2x32xf32>, vector<32x128xf32>, vector<2x128xf32> -> vector<2x128xf32>
    %c0_9 = arith.constant 0 : index
    %c0_10 = arith.constant 0 : index
    %10 = vector.load %arg5[%c0_9, %c0_10] : memref<1x128xf32, #tpu.memory_space<vmem>>, vector<1x128xf32>
    %11 = vector.broadcast %10 : vector<1x128xf32> to vector<2x128xf32>
    %12 = arith.addf %9, %11 : vector<2x128xf32>
    %c0_11 = arith.constant 0 : index
    %c0_12 = arith.constant 0 : index
    %13 = vector.load %arg6[%c0_11, %c0_12] : memref<2x128xf32, #tpu.memory_space<vmem>>, vector<2x128xf32>
    tpu.vector_store %arg6[%c0_11, %c0_12], %12 {strides = array<i32>} : memref<2x128xf32, #tpu.memory_space<vmem>>, vector<2x128xf32>,
    return
  }
  func.func @transform_0(%arg0: i32) -> (i32, i32) {
    %c0_i32 = arith.constant 0 : i32
    %c0_i32_0 = arith.constant 0 : i32
    return %arg0, %c0_i32 : i32, i32
  }
  func.func @transform_1(%arg0: i32) -> (i32, i32) {
    %c0_i32 = arith.constant 0 : i32
    %c0_i32_0 = arith.constant 0 : i32
    %c0_i32_1 = arith.constant 0 : i32
    return %c0_i32, %c0_i32_0 : i32, i32
  }
  func.func @transform_2(%arg0: i32) -> (i32, i32) {
    %c0_i32 = arith.constant 0 : i32
    %c0_i32_0 = arith.constant 0 : i32
    %c0_i32_1 = arith.constant 0 : i32
    return %c0_i32, %c0_i32_0 : i32, i32
  }
  func.func @transform_3(%arg0: i32) -> (i32, i32) {
    %c0_i32 = arith.constant 0 : i32
    %c0_i32_0 = arith.constant 0 : i32
    %c0_i32_1 = arith.constant 0 : i32
    return %c0_i32, %c0_i32_0 : i32, i32
  }
  func.func @transform_4(%arg0: i32) -> (i32, i32) {
    %c0_i32 = arith.constant 0 : i32
    %c0_i32_0 = arith.constant 0 : i32
    %c0_i32_1 = arith.constant 0 : i32
    return %c0_i32, %c0_i32_0 : i32, i32
  }
  func.func @transform_5(%arg0: i32) -> (i32, i32) {
    %c0_i32 = arith.constant 0 : i32
    %c0_i32_0 = arith.constant 0 : i32
    return %arg0, %c0_i32 : i32, i32
  }
}

</mosaic_0001>

<bundles_post_ra>
// kernel: mlp2_forward.1
= control target key start
LH: loop header
LB: loop body
LE: loop exit
PB: predicated region body
PF: predicated region fallthrough
CT: control target
= control target key end

     0   :  { %v770_v30 = vmov 1983009808   ;;  %v164_v32 = vlaneseq  ;;  %s1221_s0 = inlined_call_operand.vmem [shape: f32[2,1024], index: 0, kind: input, shape index: {}]   ;;  %s1222_s1 = inlined_call_operand.vmem [shape: f32[1024,32], index: 1, kind: input, shape index: {}]   ;;  %s1223_s2 = inlined_call_operand.vmem [shape: f32[1,32], index: 2, kind: input, shape index: {}]   ;;  %s1224_s3 = inlined_call_operand.vmem [shape: f32[32,128], index: 3, kind: input, shape index: {}]   ;;  %s1225_s4 = inlined_call_operand.vmem [shape: f32[1,128], index: 4, kind: input, shape index: {}]   ;;  %s1226_s5 = inlined_call_operand.hbm [shape: f32[2,128], index: 5, kind: output, shape index: {}]  }
   0x1   :  { %v54_v0 = vld [vmem:[%s1222_s1 + $0xf8] sm:$0xff]  ;;  %v53_v4 = vld [vmem:[%s1222_s1 + $0xf0] sm:$0xff]  ;;  %v52_v8 = vld [vmem:[%s1222_s1 + $0xe8] sm:$0xff]  ;;  %v162_v31 = vunpack.c.l.s4 %v770_v30 }
   0x2   :  { %v86_v1 = vld [vmem:[%s1222_s1 + $0x1f8] sm:$0xff]  ;;  %586 = vmatprep.subr.mxu0 %v54_v0  ;;  %v85_v5 = vld [vmem:[%s1222_s1 + $0x1f0] sm:$0xff]  ;;  %v84_v9 = vld [vmem:[%s1222_s1 + $0x1e8] sm:$0xff]  ;;  %v165_v42 = vshrl.u32 %v164_v32, 7 }
   0x3   :  { %v38_v2 = vld [vmem:[%s1222_s1 + $0x78] sm:$0xff]  ;;  %621 = vmatprep.subr.mxu1 %v86_v1  ;;  %v37_v6 = vld [vmem:[%s1222_s1 + $0x70] sm:$0xff]  ;;  %v36_v10 = vld [vmem:[%s1222_s1 + $0x68] sm:$0xff]  ;;  %v163_v41 = vunpack.c.0.s8 %v162_v31 }
   0x4   :  { %v70_v3 = vld [vmem:[%s1222_s1 + $0x178] sm:$0xff]  ;;  %587 = vmatpush3.msra.mxu0 %v38_v2  ;;  %v69_v7 = vld [vmem:[%s1222_s1 + $0x170] sm:$0xff]  ;;  %v68_v11 = vld [vmem:[%s1222_s1 + $0x168] sm:$0xff] }
   0x5   :  { %622 = vmatpush3.msra.mxu1 %v70_v3  ;;  %588 = vmatprep.subr.mxu0 %v53_v4  ;;  %v51_v12 = vld [vmem:[%s1222_s1 + $0xe0] sm:$0xff]  ;;  %v50_v16 = vld [vmem:[%s1222_s1 + $0xd8] sm:$0xff]  ;;  %v49_v20 = vld [vmem:[%s1222_s1 + $0xd0] sm:$0xff]  ;;  %v942_v51 = vsub.s32 %v163_v41, %v165_v42 }
   0x6   :  { %623 = vmatprep.subr.mxu1 %v85_v5  ;;  %589 = vmatpush3.msra.mxu0 %v37_v6  ;;  %v83_v13 = vld [vmem:[%s1222_s1 + $0x1e0] sm:$0xff]  ;;  %v82_v17 = vld [vmem:[%s1222_s1 + $0x1d8] sm:$0xff]  ;;  %v81_v21 = vld [vmem:[%s1222_s1 + $0x1d0] sm:$0xff] }
   0x7   :  { %624 = vmatpush3.msra.mxu1 %v69_v7  ;;  %590 = vmatprep.subr.mxu0 %v52_v8  ;;  %v35_v14 = vld [vmem:[%s1222_s1 + $0x60] sm:$0xff]  ;;  %v34_v18 = vld [vmem:[%s1222_s1 + $0x58] sm:$0xff]  ;;  %v33_v22 = vld [vmem:[%s1222_s1 + $0x50] sm:$0xff] }
   0x8   :  { %625 = vmatprep.subr.mxu1 %v84_v9  ;;  %v67_v15 = vld [vmem:[%s1222_s1 + $0x160] sm:$0xff]  ;;  %591 = vmatpush3.msra.mxu0 %v36_v10  ;;  %v66_v19 = vld [vmem:[%s1222_s1 + $0x158] sm:$0xff]  ;;  %v65_v23 = vld [vmem:[%s1222_s1 + $0x150] sm:$0xff] }
   0x9   :  { %626 = vmatpush3.msra.mxu1 %v68_v11  ;;  %592 = vmatprep.subr.mxu0 %v51_v12  ;;  %v48_v24 = vld [vmem:[%s1222_s1 + $0xc8] sm:$0xff]  ;;  %v47_v28 = vld [vmem:[%s1222_s1 + $0xc0] sm:$0xff]  ;;  %v46_v35 = vld [vmem:[%s1222_s1 + $0xb8] sm:$0xff] }
   0xa   :  { %627 = vmatprep.subr.mxu1 %v83_v13  ;;  %593 = vmatpush3.msra.mxu0 %v35_v14  ;;  %v80_v25 = vld [vmem:[%s1222_s1 + $0x1c8] sm:$0xff]  ;;  %v79_v29 = vld [vmem:[%s1222_s1 + $0x1c0] sm:$0xff]  ;;  %v78_v36 = vld [vmem:[%s1222_s1 + $0x1b8] sm:$0xff] }
   0xb   :  { %628 = vmatpush3.msra.mxu1 %v67_v15  ;;  %594 = vmatprep.subr.mxu0 %v50_v16  ;;  %v32_v26 = vld [vmem:[%s1222_s1 + $0x48] sm:$0xff]  ;;  %v31_v33 = vld [vmem:[%s1222_s1 + $0x40] sm:$0xff]  ;;  %v30_v37 = vld [vmem:[%s1222_s1 + $0x38] sm:$0xff] }
   0xc   :  { %629 = vmatprep.subr.mxu1 %v82_v17  ;;  %595 = vmatpush3.msra.mxu0 %v34_v18  ;;  %v64_v27 = vld [vmem:[%s1222_s1 + $0x148] sm:$0xff]  ;;  %v63_v34 = vld [vmem:[%s1222_s1 + $0x140] sm:$0xff]  ;;  %v62_v38 = vld [vmem:[%s1222_s1 + $0x138] sm:$0xff] }
   0xd   :  { %630 = vmatpush3.msra.mxu1 %v66_v19  ;;  %596 = vmatprep.subr.mxu0 %v49_v20  ;;  %v45_v39 = vld [vmem:[%s1222_s1 + $0xb0] sm:$0xff]  ;;  %v44_v45 = vld [vmem:[%s1222_s1 + $0xa8] sm:$0xff]  ;;  %v43_v49 = vld [vmem:[%s1222_s1 + $0xa0] sm:$0xff] }
   0xe   :  { %631 = vmatprep.subr.mxu1 %v81_v21  ;;  %597 = vmatpush3.msra.mxu0 %v33_v22  ;;  %v77_v40 = vld [vmem:[%s1222_s1 + $0x1b0] sm:$0xff]  ;;  %v76_v46 = vld [vmem:[%s1222_s1 + $0x1a8] sm:$0xff]  ;;  %v75_v50 = vld [vmem:[%s1222_s1 + $0x1a0] sm:$0xff] }
   0xf   :  { %632 = vmatpush3.msra.mxu1 %v65_v23  ;;  %598 = vmatprep.subr.mxu0 %v48_v24  ;;  %v29_v43 = vld [vmem:[%s1222_s1 + $0x30] sm:$0xff]  ;;  %v28_v47 = vld [vmem:[%s1222_s1 + $0x28] sm:$0xff]  ;;  %v27_v52 = vld [vmem:[%s1222_s1 + $0x20] sm:$0xff] }
  0x10   :  { %633 = vmatprep.subr.mxu1 %v80_v25  ;;  %599 = vmatpush3.msra.mxu0 %v32_v26  ;;  %v61_v44 = vld [vmem:[%s1222_s1 + $0x130] sm:$0xff]  ;;  %v60_v48 = vld [vmem:[%s1222_s1 + $0x128] sm:$0xff]  ;;  %v59_v53 = vld [vmem:[%s1222_s1 + $0x120] sm:$0xff] }
  0x11   :  { %634 = vmatpush3.msra.mxu1 %v64_v27  ;;  %600 = vmatprep.subr.mxu0 %v47_v28  ;;  %v21_v54 = vld [vmem:[%s1221_s0] sm:$0xff]  ;;  %v42_v55 = vld [vmem:[%s1222_s1 + $0x98] sm:$0xff]  ;;  %v41_v60 = vld [vmem:[%s1222_s1 + $0x90] sm:$0xff] }
  0x12   :  { %635 = vmatprep.subr.mxu1 %v79_v29  ;;  %601 = vmatpush3.msra.mxu0 %v31_v33  ;;  %v74_v56 = vld [vmem:[%s1222_s1 + $0x198] sm:$0xff]  ;;  %v160_v57 = vcombine.high %v21_v54, %v21_v54  ;;  %v73_v61 = vld [vmem:[%s1222_s1 + $0x190] sm:$0xff]  ;;  %v167_v62 = vrot.slane %v21_v54, %v942_v51  ;;  %v40_v1 = vld [vmem:[%s1222_s1 + $0x88] sm:$0xff] }
  0x13   :  { %636 = vmatpush3.msra.mxu1 %v63_v34  ;;  %602 = vmatprep.subr.mxu0 %v46_v35  ;;  %v26_v58 = vld [vmem:[%s1222_s1 + $0x18] sm:$0xff]  ;;  %v25_v63 = vld [vmem:[%s1222_s1 + $0x10] sm:$0xff]  ;;  %v72_v2 = vld [vmem:[%s1222_s1 + $0x188] sm:$0xff] }
  0x14   :  { %637 = vmatprep.subr.mxu1 %v78_v36  ;;  %603 = vmatpush3.msra.mxu0 %v30_v37  ;;  %v58_v59 = vld [vmem:[%s1222_s1 + $0x118] sm:$0xff]  ;;  %v57_v0 = vld [vmem:[%s1222_s1 + $0x110] sm:$0xff]  ;;  %v174_v3 = vrot.slane %v160_v57, %v942_v51  ;;  %v24_v4 = vld [vmem:[%s1222_s1 + $0x8] sm:$0xff]  ;;  %v175_v8 = vcombine.high %v167_v62, %v167_v62 }
  0x15   :  { %638 = vmatpush3.msra.mxu1 %v62_v38  ;;  %604 = vmatprep.subr.mxu0 %v45_v39  ;;  %v56_v5 = vld [vmem:[%s1222_s1 + $0x108] sm:$0xff]  ;;  %v39_v6 = vld [vmem:[%s1222_s1 + $0x80] sm:$0xff]  ;;  %v118_v12 = vld [vmem:[%s1222_s1 + $0x2f8] sm:$0xff] }
  0x16   :  { %639 = vmatprep.subr.mxu1 %v77_v40  ;;  %605 = vmatpush3.msra.mxu0 %v29_v43  ;;  %v71_v7 = vld [vmem:[%s1222_s1 + $0x180] sm:$0xff]  ;;  %v176_v11 = vcombine.high %v174_v3, %v174_v3  ;;  %v150_v13 = vld [vmem:[%s1222_s1 + $0x3f8] sm:$0xff]  ;;  %v117_v16 = vld [vmem:[%s1222_s1 + $0x2f0] sm:$0xff] }
  0x17   :  { %640 = vmatpush3.msra.mxu1 %v61_v44  ;;  %606 = vmatprep.subr.mxu0 %v44_v45  ;;  %v23_v9 = vld [vmem:[%s1222_s1] sm:$0xff]  ;;  %v102_v14 = vld [vmem:[%s1222_s1 + $0x278] sm:$0xff]  ;;  %v149_v17 = vld [vmem:[%s1222_s1 + $0x3f0] sm:$0xff] }
  0x18   :  { %641 = vmatprep.subr.mxu1 %v76_v46  ;;  %607 = vmatpush3.msra.mxu0 %v28_v47  ;;  %v55_v10 = vld [vmem:[%s1222_s1 + $0x100] sm:$0xff]  ;;  %v134_v15 = vld [vmem:[%s1222_s1 + $0x378] sm:$0xff]  ;;  %v101_v18 = vld [vmem:[%s1222_s1 + $0x270] sm:$0xff] }
  0x19   :  { %642 = vmatpush3.msra.mxu1 %v60_v48  ;;  %608 = vmatprep.subr.mxu0 %v43_v49  ;;  %v133_v19 = vld [vmem:[%s1222_s1 + $0x370] sm:$0xff]  ;;  %v116_v20 = vld [vmem:[%s1222_s1 + $0x2e8] sm:$0xff]  ;;  %v115_v24 = vld [vmem:[%s1222_s1 + $0x2e0] sm:$0xff] }
  0x1a   :  { %643 = vmatprep.subr.mxu1 %v75_v50  ;;  %609 = vmatpush3.msra.mxu0 %v27_v52  ;;  %v148_v21 = vld [vmem:[%s1222_s1 + $0x3e8] sm:$0xff]  ;;  %v147_v25 = vld [vmem:[%s1222_s1 + $0x3e0] sm:$0xff]  ;;  %v114_v28 = vld [vmem:[%s1222_s1 + $0x2d8] sm:$0xff] }
  0x1b   :  { %644 = vmatpush3.msra.mxu1 %v59_v53  ;;  %610 = vmatprep.subr.mxu0 %v42_v55  ;;  %v100_v22 = vld [vmem:[%s1222_s1 + $0x268] sm:$0xff]  ;;  %v99_v26 = vld [vmem:[%s1222_s1 + $0x260] sm:$0xff]  ;;  %v146_v29 = vld [vmem:[%s1222_s1 + $0x3d8] sm:$0xff] }
  0x1c   :  { %645 = vmatprep.subr.mxu1 %v74_v56  ;;  %611 = vmatpush3.msra.mxu0 %v26_v58  ;;  %v132_v23 = vld [vmem:[%s1222_s1 + $0x368] sm:$0xff]  ;;  %v131_v27 = vld [vmem:[%s1222_s1 + $0x360] sm:$0xff]  ;;  %v98_v30 = vld [vmem:[%s1222_s1 + $0x258] sm:$0xff] }
  0x1d   :  { %646 = vmatpush3.msra.mxu1 %v58_v59  ;;  %612 = vmatprep.subr.mxu0 %v41_v60  ;;  %v130_v31 = vld [vmem:[%s1222_s1 + $0x358] sm:$0xff]  ;;  %v113_v32 = vld [vmem:[%s1222_s1 + $0x2d0] sm:$0xff] }
  0x1e   :  { %647 = vmatprep.subr.mxu1 %v73_v61  ;;  %613 = vmatpush3.msra.mxu0 %v25_v63  ;;  %v145_v33 = vld [vmem:[%s1222_s1 + $0x3d0] sm:$0xff] }
  0x1f   :  { %648 = vmatpush3.msra.mxu1 %v57_v0  ;;  %614 = vmatprep.subr.mxu0 %v40_v1  ;;  %v97_v34 = vld [vmem:[%s1222_s1 + $0x250] sm:$0xff] }
  0x20   :  { %649 = vmatprep.subr.mxu1 %v72_v2  ;;  %615 = vmatpush3.msra.mxu0 %v24_v4  ;;  %v129_v35 = vld [vmem:[%s1222_s1 + $0x350] sm:$0xff] }
  0x21   :  { %650 = vmatpush3.msra.mxu1 %v56_v5  ;;  %616 = vmatprep.subr.mxu0 %v39_v6 }
  0x22   :  { %651 = vmatprep.subr.mxu1 %v71_v7  ;;  %617 = vmatpush3.msra.mxu0 %v23_v9 }
  0x23   :  { %266 = vmatprep.mubr.f32.mxu0 %v175_v8  ;;  %652 = vmatpush3.msra.mxu1 %v55_v10 }
  0x24   :  { %267 = vmatmul.mubr.f32.vlgmr.msra.gmra.mxu0 %v167_v62  ;;  %336 = vmatprep.mubr.f32.mxu1 %v176_v11 }
  0x25   :  { %656 = vmatprep.subr.mxu0 %v118_v12  ;;  %691 = vmatprep.subr.mxu1 %v150_v13 }
  0x26   :  { %337 = vmatmul.mubr.f32.vlgmr.msra.gmra.mxu1 %v174_v3  ;;  %657 = vmatpush3.msra.mxu0 %v102_v14 }
  0x27   :  { %692 = vmatpush3.msra.mxu1 %v134_v15  ;;  %658 = vmatprep.subr.mxu0 %v117_v16 }
  0x28   :  { %693 = vmatprep.subr.mxu1 %v149_v17  ;;  %659 = vmatpush3.msra.mxu0 %v101_v18 }
  0x29   :  { %694 = vmatpush3.msra.mxu1 %v133_v19  ;;  %660 = vmatprep.subr.mxu0 %v116_v20 }
  0x2a   :  { %695 = vmatprep.subr.mxu1 %v148_v21  ;;  %661 = vmatpush3.msra.mxu0 %v100_v22 }
  0x2b   :  { %696 = vmatpush3.msra.mxu1 %v132_v23  ;;  %662 = vmatprep.subr.mxu0 %v115_v24 }
  0x2c   :  { %697 = vmatprep.subr.mxu1 %v147_v25  ;;  %663 = vmatpush3.msra.mxu0 %v99_v26 }
  0x2d   :  { %698 = vmatpush3.msra.mxu1 %v131_v27  ;;  %664 = vmatprep.subr.mxu0 %v114_v28 }
  0x2e   :  { %699 = vmatprep.subr.mxu1 %v146_v29 }
  0x2f   :  { %10 = vsyncpa [#allocation3], 0  ;;  %665 = vmatpush3.msra.mxu0 %v98_v30  ;;  %700 = vmatpush3.msra.mxu1 %v130_v31  ;;  %v112_v36 = vld [vmem:[%s1222_s1 + $0x2c8] sm:$0xff]  ;;  %v111_v40 = vld [vmem:[%s1222_s1 + $0x2c0] sm:$0xff]  ;;  %v771_v18 = vmov 0.0   ;;  %vm772_vm0 = vmmov 0  }
  0x30   :  { %v144_v37 = vld [vmem:[%s1222_s1 + $0x3c8] sm:$0xff]  ;;  %666 = vmatprep.subr.mxu0 %v113_v32  ;;  %701 = vmatprep.subr.mxu1 %v145_v33  ;;  %v143_v41 = vld [vmem:[%s1222_s1 + $0x3c0] sm:$0xff]  ;;  %v110_v44 = vld [vmem:[%s1222_s1 + $0x2b8] sm:$0xff]  ;;  %vm494_vm1 = vcmask 261120  }
  0x31   :  { %v96_v38 = vld [vmem:[%s1222_s1 + $0x248] sm:$0xff]  ;;  %667 = vmatpush3.msra.mxu0 %v97_v34  ;;  %702 = vmatpush3.msra.mxu1 %v129_v35  ;;  %v95_v42 = vld [vmem:[%s1222_s1 + $0x240] sm:$0xff]  ;;  %v142_v45 = vld [vmem:[%s1222_s1 + $0x3b8] sm:$0xff] }
  0x32   :  { %v128_v39 = vld [vmem:[%s1222_s1 + $0x348] sm:$0xff]  ;;  %668 = vmatprep.subr.mxu0 %v112_v36  ;;  %703 = vmatprep.subr.mxu1 %v144_v37  ;;  %v127_v43 = vld [vmem:[%s1222_s1 + $0x340] sm:$0xff]  ;;  %v94_v46 = vld [vmem:[%s1222_s1 + $0x238] sm:$0xff] }
  0x33   :  { %669 = vmatpush3.msra.mxu0 %v96_v38  ;;  %704 = vmatpush3.msra.mxu1 %v128_v39  ;;  %v126_v47 = vld [vmem:[%s1222_s1 + $0x338] sm:$0xff]  ;;  %v109_v48 = vld [vmem:[%s1222_s1 + $0x2b0] sm:$0xff]  ;;  %v108_v53 = vld [vmem:[%s1222_s1 + $0x2a8] sm:$0xff] }
  0x34   :  { %670 = vmatprep.subr.mxu0 %v111_v40  ;;  %705 = vmatprep.subr.mxu1 %v143_v41  ;;  %v141_v49 = vld [vmem:[%s1222_s1 + $0x3b0] sm:$0xff]  ;;  %v140_v54 = vld [vmem:[%s1222_s1 + $0x3a8] sm:$0xff]  ;;  %v107_v58 = vld [vmem:[%s1222_s1 + $0x2a0] sm:$0xff] }
  0x35   :  { %671 = vmatpush3.msra.mxu0 %v95_v42  ;;  %706 = vmatpush3.msra.mxu1 %v127_v43  ;;  %v93_v50 = vld [vmem:[%s1222_s1 + $0x230] sm:$0xff]  ;;  %v22_v55 = vld [vmem:[%s1221_s0 + $0x8] sm:$0xff]  ;;  %v139_v59 = vld [vmem:[%s1222_s1 + $0x3a0] sm:$0xff] }
  0x36   :  { %672 = vmatprep.subr.mxu0 %v110_v44  ;;  %707 = vmatprep.subr.mxu1 %v142_v45  ;;  %v125_v52 = vld [vmem:[%s1222_s1 + $0x330] sm:$0xff]  ;;  %v92_v56 = vld [vmem:[%s1222_s1 + $0x228] sm:$0xff]  ;;  %v91_v60 = vld [vmem:[%s1222_s1 + $0x220] sm:$0xff]  ;;  %v177_v62 = vcombine.high %v22_v55, %v22_v55  ;;  %v184_v5 = vrot.slane %v22_v55, %v942_v51 }
  0x37   :  { %673 = vmatpush3.msra.mxu0 %v94_v46  ;;  %708 = vmatpush3.msra.mxu1 %v126_v47  ;;  %v124_v57 = vld [vmem:[%s1222_s1 + $0x328] sm:$0xff]  ;;  %v123_v61 = vld [vmem:[%s1222_s1 + $0x320] sm:$0xff]  ;;  %v106_v63 = vld [vmem:[%s1222_s1 + $0x298] sm:$0xff] }
  0x38   :  { %674 = vmatprep.subr.mxu0 %v109_v48  ;;  %709 = vmatprep.subr.mxu1 %v141_v49  ;;  %v138_v0 = vld [vmem:[%s1222_s1 + $0x398] sm:$0xff]  ;;  %v105_v3 = vld [vmem:[%s1222_s1 + $0x290] sm:$0xff]  ;;  %v191_v8 = vrot.slane %v177_v62, %v942_v51  ;;  %v104_v9 = vld [vmem:[%s1222_s1 + $0x288] sm:$0xff]  ;;  %v192_v14 = vcombine.high %v184_v5, %v184_v5 }
  0x39   :  { %675 = vmatpush3.msra.mxu0 %v93_v50  ;;  %710 = vmatpush3.msra.mxu1 %v125_v52  ;;  %v90_v1 = vld [vmem:[%s1222_s1 + $0x218] sm:$0xff]  ;;  %v137_v4 = vld [vmem:[%s1222_s1 + $0x390] sm:$0xff]  ;;  %v136_v10 = vld [vmem:[%s1222_s1 + $0x388] sm:$0xff] }
  0x3a   :  { %676 = vmatprep.subr.mxu0 %v108_v53  ;;  %711 = vmatprep.subr.mxu1 %v140_v54  ;;  %v122_v2 = vld [vmem:[%s1222_s1 + $0x318] sm:$0xff]  ;;  %v89_v6 = vld [vmem:[%s1222_s1 + $0x210] sm:$0xff]  ;;  %v88_v11 = vld [vmem:[%s1222_s1 + $0x208] sm:$0xff]  ;;  %v193_v16 = vcombine.high %v191_v8, %v191_v8 }
  0x3b   :  { %677 = vmatpush3.msra.mxu0 %v92_v56  ;;  %712 = vmatpush3.msra.mxu1 %v124_v57  ;;  %v121_v7 = vld [vmem:[%s1222_s1 + $0x310] sm:$0xff]  ;;  %v120_v51 = vld [vmem:[%s1222_s1 + $0x308] sm:$0xff]  ;;  %v103_v12 = vld [vmem:[%s1222_s1 + $0x280] sm:$0xff] }
  0x3c   :  { %678 = vmatprep.subr.mxu0 %v107_v58  ;;  %713 = vmatprep.subr.mxu1 %v139_v59  ;;  %v135_v13 = vld [vmem:[%s1222_s1 + $0x380] sm:$0xff]  ;;  %v486_v19 = vld [vmem:[%s1224_s3 + $0x18] sm:$0xff]  ;;  %v485_v20 = vld [vmem:[%s1224_s3 + $0x10] sm:$0xff] }
  0x3d   :  { %679 = vmatpush3.msra.mxu0 %v91_v60  ;;  %714 = vmatpush3.msra.mxu1 %v123_v61  ;;  %v87_v15 = vld [vmem:[%s1222_s1 + $0x200] sm:$0xff]  ;;  %v484_v21 = vld [vmem:[%s1224_s3 + $0x8] sm:$0xff] }
  0x3e   :  { %680 = vmatprep.subr.mxu0 %v106_v63  ;;  %715 = vmatprep.subr.mxu1 %v138_v0  ;;  %v119_v17 = vld [vmem:[%s1222_s1 + $0x300] sm:$0xff] }
  0x3f   :  { %681 = vmatpush3.msra.mxu0 %v90_v1  ;;  %716 = vmatpush3.msra.mxu1 %v122_v2  ;;  %v483_v22 = vld [vmem:[%s1224_s3] sm:$0xff] }
  0x40   :  { %682 = vmatprep.subr.mxu0 %v105_v3  ;;  %717 = vmatprep.subr.mxu1 %v137_v4  ;;  %v583_v27 = vld [vmem:[%s1223_s2] ss:$0 sm:$0xff]  ;;  %s773_s2 = smov [#allocation2]  }
  0x41   :  { %683 = vmatpush3.msra.mxu0 %v89_v6  ;;  %718 = vmatpush3.msra.mxu1 %v121_v7  ;;  %v584_v41 = vld [vmem:[%s1225_s4] ss:$0 sm:$0xff]  ;;  %s575_s11 = sshll.u32 %s773_s2, 4  ;;  %s576_s11 = int_to_ptr.vmem [resolvable:$true] %s575_s11 }
  0x42   :  { %684 = vmatprep.subr.mxu0 %v104_v9  ;;  %719 = vmatprep.subr.mxu1 %v136_v10  ;;  %s748_s12 = scalar_lea.vmem %s576_s11, 32  ;;  %p753_p1 = scmp.lt.s32.totalorder %s576_s11, %s576_s11 }
  0x43   :  { %685 = vmatpush3.msra.mxu0 %v88_v11  ;;  %720 = vmatpush3.msra.mxu1 %v120_v51  ;;  %p749_p0 = scmp.ne.s32.totalorder %s576_s11, %s748_s12  ;;  %p754_p2 = scmp.lt.s32.totalorder %s748_s12, %s748_s12 }
  0x44   :  { %686 = vmatprep.subr.mxu0 %v103_v12  ;;  %721 = vmatprep.subr.mxu1 %v135_v13 }
  0x45   :  { %687 = vmatpush3.msra.mxu0 %v87_v15  ;;  %406 = vmatprep.mubr.f32.mxu0 %v192_v14  ;;  %p755_p3 = por %p754_p2, %p753_p1 }
  0x46   :  { %722 = vmatpush3.msra.mxu1 %v119_v17  ;;  %476 = vmatprep.mubr.f32.mxu1 %v193_v16 }
  0x47   :  { %407 = vmatmul.mubr.f32.vlgmr.msra.gmra.mxu0 %v184_v5  ;;  %477 = vmatmul.mubr.f32.vlgmr.msra.gmra.mxu1 %v191_v8  ;;  %p756_p4 = pnand %p755_p3, %p749_p0 }
  0x48   :  { %731 = vmatprep.subr.mxu0 %v771_v18  ;;  %739 = vmatprep.mubr.msk.f32.mxu0 %vm772_vm0, %v771_v18 }
  0x49   :  { %732 = vmatpush3.msra.mxu0 %v486_v19 }
  0x4a   :  { %733 = vmatprep.subr.mxu0 %v771_v18 }
  0x4b   :  { %734 = vmatpush3.msra.mxu0 %v485_v20 }
  0x4c   :  { %735 = vmatprep.subr.mxu0 %v771_v18 }
  0x4d   :  { %736 = vmatpush3.msra.mxu0 %v484_v21 }
  0x4e   :  { %737 = vmatprep.subr.mxu0 %v771_v18 }
  0x4f   :  { %738 = vmatpush3.msra.mxu0 %v483_v22 }
  0xe4   :  { %v618_v23 = vpop.f32.mrf.mxu0 }
  0xe6   :  { %v653_v24 = vpop.f32.mrf.mxu1  ;;  %v619_v25 = vpop.f32.mrf.mxu0 }
  0xe7   :  { %v620_v26 = vadd.f32 %v619_v25, %v618_v23 }
  0xe8   :  { %v654_v28 = vpop.f32.mrf.mxu1 }
  0xe9   :  { %v269_v29 = vadd.f32 %v620_v26, %v583_v27  ;;  %v655_v30 = vadd.f32 %v654_v28, %v653_v24 }
  0xeb   :  { %v339_v35 = vadd.f32 %v655_v30, %v269_v29 }
 0x107   :  { %v688_v31 = vpop.f32.mrf.mxu0  ;;  %v723_v32 = vpop.f32.mrf.mxu1 }
 0x109   :  { %v689_v33 = vpop.f32.mrf.mxu0  ;;  %v724_v34 = vpop.f32.mrf.mxu1 }
 0x10a   :  { %v690_v36 = vadd.f32 %v689_v33, %v688_v31  ;;  %v725_v38 = vadd.f32 %v724_v34, %v723_v32 }
 0x10c   :  { %v409_v37 = vadd.f32 %v690_v36, %v339_v35 }
 0x10e   :  { %v479_v39 = vadd.f32 %v725_v38, %v409_v37 }
 0x110   :  { %v482_v40 = vmax.f32 %v479_v39, 0.0 }
 0x112   :  { %740 = vmatmul.mubr.msk.f32.vlgmr.msra.gmra.mxu0 %vm494_vm1, %v482_v40 }
 0x1d2   :  { %v564_v42 = vpop.f32.mrf.mxu0 }
 0x1d3   :  { %v565_v43 = vadd.f32 %v584_v41, %v564_v42 }
 0x1d4   :  { %v741_v44 = vpop.f32.mrf.mxu0 }
 0x1d5   :  { %568 = vst [vmem:[#allocation2] sm:$0x3] %v565_v43 }
 0x1d6   :  { %759 = shalt.err (!%p756_p4)
}
 0x1d7   :  { %578 = dma.vmem_to_hbm [thread:$0]  %s576_s11, 32, %s1226_s5, [#allocation3]  }
 0x1d8   :  { %768 = dma.done.wait [#allocation3], 32  }
 0x1d9   :  { %769 = vsyncadd [#allocation3], 4294967264 }
 0x1da   :  { %582 = vsyncpa [#allocation3], 1 }

</bundles_post_ra>
